<compile_context>
chip_gen: v6e
topology: v6e:2x2x1
jax: 0.10.0
libtpu: 0.0.40
codegen_flags: <defaults>
</compile_context>

<pallas_src>
import functools

import jax
import jax.numpy as jnp
from jax.experimental import pallas as pl
from jax.experimental.pallas import tpu as pltpu


# ----------------------------------------------------------------------------
# helpers
# ----------------------------------------------------------------------------
def _pick_tile(dim, max_tile):
    """Largest legal tile: `max_tile` if it divides `dim`, else the full dim."""
    if dim <= max_tile or dim % max_tile != 0:
        return dim
    return max_tile


_VMEM_LIMIT = 32 * 1024 * 1024  # explicit, safe on v5e/v6e/v7x


# ----------------------------------------------------------------------------
# Kernel 1: fused projection  (feat = x @ W, alpha = x @ att_w)
# ----------------------------------------------------------------------------
def _proj_kernel(x_ref, w_ref, aw_ref, feat_ref, alpha_ref, feat_acc, alpha_acc):
    kb = pl.program_id(1)

    @pl.when(kb == 0)
    def _init():
        feat_acc[...] = jnp.zeros_like(feat_acc)
        alpha_acc[...] = jnp.zeros_like(alpha_acc)

    xb = x_ref[...]                                             # (TM, TK) bf16
    feat_acc[...] += jnp.dot(xb, w_ref[...],
                             preferred_element_type=jnp.float32)
    alpha_acc[...] += jnp.dot(xb, aw_ref[...],
                              preferred_element_type=jnp.float32)

    @pl.when(kb == pl.num_programs(1) - 1)
    def _fin():
        feat_ref[...] = feat_acc[...].astype(feat_ref.dtype)    # bf16 feat
        alpha_ref[...] = alpha_acc[...]                         # f32 scores


def gat_projection(x, w, att_w, *, tm=256, tkk=512):
    n, fin = x.shape
    hc = w.shape[1]
    two_h = att_w.shape[1]
    tm = _pick_tile(n, tm)
    tkk = _pick_tile(fin, tkk)
    grid = (n // tm, fin // tkk)
    return pl.pallas_call(
        _proj_kernel,
        out_shape=(jax.ShapeDtypeStruct((n, hc), jnp.bfloat16),
                   jax.ShapeDtypeStruct((n, two_h), jnp.float32)),
        grid=grid,
        in_specs=[
            pl.BlockSpec((tm, tkk), lambda m, k: (m, k)),
            pl.BlockSpec((tkk, hc), lambda m, k: (k, 0)),
            pl.BlockSpec((tkk, two_h), lambda m, k: (k, 0)),
        ],
        out_specs=(
            pl.BlockSpec((tm, hc), lambda m, k: (m, 0)),
            pl.BlockSpec((tm, two_h), lambda m, k: (m, 0)),
        ),
        scratch_shapes=[
            pltpu.VMEM((tm, hc), jnp.float32),
            pltpu.VMEM((tm, two_h), jnp.float32),
        ],
        compiler_params=pltpu.CompilerParams(
            dimension_semantics=("parallel", "arbitrary"),
            vmem_limit_bytes=_VMEM_LIMIT),
    )(x, w, att_w)


# ----------------------------------------------------------------------------
# Kernel 2: flash-style GAT attention + fused bias + ELU epilogue
# ----------------------------------------------------------------------------
def _gat_attn_kernel(adj_ref, alpha_src_ref, alpha_dst_ref, feat_ref, bias_ref,
                     out_ref, m_ref, l_ref, acc_ref, *,
                     heads, cdim, concat, negative_slope):
    kb = pl.program_id(1)

    @pl.when(kb == 0)
    def _init():
        m_ref[...] = jnp.full_like(m_ref, -1e30)
        l_ref[...] = jnp.zeros_like(l_ref)
        acc_ref[...] = jnp.zeros_like(acc_ref)

    adj = adj_ref[...].astype(jnp.float32)        # (TQ, TK) edge multiplicities
    has_edge = adj > 0.0
    a_src_all = alpha_src_ref[...]                # (TK, 2H): cols [0, H)  = src scores
    a_dst_all = alpha_dst_ref[...]                # (TQ, 2H): cols [H, 2H) = dst scores
    feat = feat_ref[...]                          # (TK, H*C) bf16
    m_all = m_ref[...]                            # (TQ, H)
    l_all = l_ref[...]                            # (TQ, H)
    acc_all = acc_ref[...]                        # (TQ, H*C)

    m_cols, l_cols, acc_cols = [], [], []
    for h in range(heads):                        # adj tile reused across all heads
        a_src = jnp.transpose(a_src_all[:, h:h + 1])            # (1, TK)
        a_dst = a_dst_all[:, heads + h:heads + h + 1]           # (TQ, 1)
        e = a_dst + a_src                                       # (TQ, TK), f32
        e = jnp.where(e > 0, e, negative_slope * e)             # LeakyReLU(0.2)
        e = jnp.where(has_edge, e, -1e30)                       # mask before max (f32 only)

        m_prev = m_all[:, h:h + 1]
        m_new = jnp.maximum(m_prev, jnp.max(e, axis=-1, keepdims=True))
        corr = jnp.exp(m_prev - m_new)
        # Multiplying by the multiplicity both zeroes non-edges (count == 0) and
        # reproduces PyG's per-duplicate-edge softmax terms on multigraphs.
        p = adj * jnp.exp(e - m_new)                            # (TQ, TK), f32

        l_cols.append(corr * l_all[:, h:h + 1] +
                      jnp.sum(p, axis=-1, keepdims=True))
        feat_h = feat[:, h * cdim:(h + 1) * cdim]               # (TK, C) bf16
        pv = jnp.dot(p.astype(jnp.bfloat16), feat_h,
                     preferred_element_type=jnp.float32)        # (TQ, C) on MXU
        acc_cols.append(corr * acc_all[:, h * cdim:(h + 1) * cdim] + pv)
        m_cols.append(m_new)

    m_new_all = jnp.concatenate(m_cols, axis=-1) if heads > 1 else m_cols[0]
    l_new_all = jnp.concatenate(l_cols, axis=-1) if heads > 1 else l_cols[0]
    acc_new_all = jnp.concatenate(acc_cols, axis=-1) if heads > 1 else acc_cols[0]
    m_ref[...] = m_new_all
    l_ref[...] = l_new_all
    acc_ref[...] = acc_new_all

    @pl.when(kb == pl.num_programs(1) - 1)
    def _finalize():
        # TODO(synk): attention-coefficient dropout (training mode) is skipped (eval semantics).
        inv_l = pl.reciprocal(l_new_all, approx=True)           # (TQ, H)
        if concat:
            pieces = [acc_new_all[:, h * cdim:(h + 1) * cdim] * inv_l[:, h:h + 1]
                      for h in range(heads)]
            y = jnp.concatenate(pieces, axis=-1) if heads > 1 else pieces[0]
        else:
            y = acc_new_all[:, 0:cdim] * inv_l[:, 0:1]
            for h in range(1, heads):
                y = y + acc_new_all[:, h * cdim:(h + 1) * cdim] * inv_l[:, h:h + 1]
            y = y * (1.0 / float(heads))
        y = y + bias_ref[...]                                   # conv bias
        out_ref[...] = jnp.where(y > 0, y, jnp.exp(y) - 1.0)    # F.elu fused in epilogue


def gat_attention(adj, alpha, feat, bias, *, heads, cdim, concat,
                  negative_slope=0.2, tq=256, tk=256):
    n = adj.shape[0]
    hc = feat.shape[1]
    out_width = hc if concat else cdim
    tq = _pick_tile(n, tq)
    tk = _pick_tile(n, tk)
    grid = (n // tq, n // tk)
    kernel = functools.partial(_gat_attn_kernel, heads=heads, cdim=cdim,
                               concat=concat, negative_slope=negative_slope)
    return pl.pallas_call(
        kernel,
        out_shape=jax.ShapeDtypeStruct((n, out_width), jnp.float32),
        grid=grid,
        in_specs=[
            pl.BlockSpec((tq, tk), lambda q, k: (q, k)),             # adj tile (int8)
            pl.BlockSpec((tk, 2 * heads), lambda q, k: (k, 0)),      # alpha rows (sources)
            pl.BlockSpec((tq, 2 * heads), lambda q, k: (q, 0)),      # alpha rows (targets)
            pl.BlockSpec((tk, hc), lambda q, k: (k, 0)),             # source features
            pl.BlockSpec((1, out_width), lambda q, k: (0, 0)),       # conv bias
        ],
        out_specs=pl.BlockSpec((tq, out_width), lambda q, k: (q, 0)),
        scratch_shapes=[
            pltpu.VMEM((tq, heads), jnp.float32),     # running max
            pltpu.VMEM((tq, heads), jnp.float32),     # running denominator
            pltpu.VMEM((tq, hc), jnp.float32),        # weighted-value accumulator
        ],
        compiler_params=pltpu.CompilerParams(
            dimension_semantics=("parallel", "arbitrary"),
            vmem_limit_bytes=_VMEM_LIMIT),
    )(adj, alpha, alpha, feat, bias)


# ----------------------------------------------------------------------------
# GAT layer / model glue (plain JAX: parameter setup only)
# ----------------------------------------------------------------------------
def gat_conv_layer(x, adj, params, *, heads, out_per_head, concat):
    feat, alpha = gat_projection(x.astype(jnp.bfloat16),
                                 params["W"], params["att_w"])
    return gat_attention(adj, alpha, feat, params["bias"],
                         heads=heads, cdim=out_per_head, concat=concat)


def edge_index_to_adj(edge_index, num_nodes):
    """int8 dense adjacency of edge multiplicities; adj[target, source] = #edges.

    Matches GATConv(add_self_loops=True): existing self loops are removed and
    exactly one self loop per node is added (diag set to 1). Duplicate
    (parallel) edges keep their multiplicity, matching PyG's sparse softmax.
    """
    src = edge_index[0]
    dst = edge_index[1]
    adj = jnp.zeros((num_nodes, num_nodes), jnp.int32)
    adj = adj.at[dst, src].add(1)
    diag = jnp.arange(num_nodes)
    adj = adj.at[diag, diag].set(1)
    adj = jnp.minimum(adj, 127)          # int8 safety clamp for extreme multigraphs
    return adj.astype(jnp.int8)


class GATCustomPallas:
    """Pallas reimplementation of GAT_Custom.forward (eval mode, jk=None)."""

    def __init__(self, in_channels, hidden_per_head, num_layers, out_channels,
                 heads=8, output_heads=1, seed=42):
        if isinstance(hidden_per_head, int):
            hidden_per_head = [hidden_per_head] * (num_layers - 1)
        if isinstance(heads, int):
            heads = [heads] * (num_layers - 1)
        self.num_layers = num_layers

        layer_defs = [(in_channels, hidden_per_head[0], heads[0], True)]
        for i in range(1, num_layers - 1):
            layer_defs.append((hidden_per_head[i - 1] * heads[i - 1],
                               hidden_per_head[i], heads[i], True))
        layer_defs.append((hidden_per_head[-1] * heads[-1],
                           out_channels, output_heads, False))
        self.layer_defs = layer_defs

        key = jax.random.PRNGKey(seed)
        self.params = []
        for (fin, c, h, concat) in layer_defs:
            key, kw, ks, kd = jax.random.split(key, 4)
            w = jax.random.normal(kw, (fin, h * c), jnp.float32) * 0.1
            att_src = jax.random.normal(ks, (h, c), jnp.float32) * 0.1
            att_dst = jax.random.normal(kd, (h, c), jnp.float32) * 0.1
            # Fold the per-head attention projections into extra matmul columns:
            #   alpha_src = x @ (W_head @ att_src),  alpha_dst = x @ (W_head @ att_dst)
            w3 = w.reshape(fin, h, c)
            att_w = jnp.concatenate([jnp.einsum("fhc,hc->fh", w3, att_src),
                                     jnp.einsum("fhc,hc->fh", w3, att_dst)],
                                    axis=1)                       # (fin, 2H)
            width = h * c if concat else c
            bias = jnp.zeros((1, width), jnp.float32)
            self.params.append({
                "W": w.astype(jnp.bfloat16),
                "att_w": att_w.astype(jnp.bfloat16),
                "bias": bias,
            })

    def __call__(self, x, edge_index):
        n = x.shape[0]
        adj = edge_index_to_adj(edge_index, n)
        # TODO(synk): F.dropout on node features is a no-op in eval mode (implemented as such).
        # TODO(synk): jk != None and skip_connection=True branches are not exercised (defaults).
        for i, (fin, c, h, concat) in enumerate(self.layer_defs):
            x = gat_conv_layer(x, adj, self.params[i],
                               heads=h, out_per_head=c, concat=concat)
        return x


# ----------------------------------------------------------------------------
# Example run
# ----------------------------------------------------------------------------
if __name__ == "__main__":
    key = jax.random.PRNGKey(0)
    k_x, k_src, k_dst = jax.random.split(key, 3)

    num_nodes = 32
    in_channels = 16
    hidden_per_head = 8
    heads = 4
    num_layers = 2
    out_channels = 7
    num_edges = 64

    x = jax.random.normal(k_x, (num_nodes, in_channels), jnp.float32)
    edge_index = jnp.stack([
        jax.random.randint(k_src, (num_edges,), 0, num_nodes),
        jax.random.randint(k_dst, (num_edges,), 0, num_nodes),
    ]).astype(jnp.int32)

    model = GATCustomPallas(in_channels, hidden_per_head, num_layers,
                            out_channels, heads=heads, output_heads=1)

    out = model(x, edge_index)
    out = jax.block_until_ready(out)
    assert out.shape == (num_nodes, out_channels)
    assert bool(jnp.all(jnp.isfinite(out)))
    print("KERNEL_OK")
</pallas_src>

<mosaic_0001>
module attributes {stable_mosaic.version = 11 : i64} {
  func.func @_proj_kernel(%arg0: i32, %arg1: i32, %arg2: memref<32x16xbf16, #tpu.memory_space<vmem>>, %arg3: memref<16x32xbf16, #tpu.memory_space<vmem>>, %arg4: memref<16x8xbf16, #tpu.memory_space<vmem>>, %arg5: memref<32x32xbf16, #tpu.memory_space<vmem>>, %arg6: memref<32x8xf32, #tpu.memory_space<vmem>>, %arg7: memref<32x32xf32, #tpu.memory_space<vmem>>, %arg8: memref<32x8xf32, #tpu.memory_space<vmem>>) attributes {dimension_semantics = [#tpu.dimension_semantics<parallel>, #tpu.dimension_semantics<arbitrary>], iteration_bounds = array<i64: 1, 1>, scalar_prefetch = 0 : i64, scratch_operands = 2 : i64, tpu.core_type = #tpu.core_type<tc>, window_params = [{transform_indices = @transform_0, window_bounds = array<i64: 32, 16>}, {transform_indices = @transform_1, window_bounds = array<i64: 16, 32>}, {transform_indices = @transform_2, window_bounds = array<i64: 16, 8>}, {transform_indices = @transform_3, window_bounds = array<i64: 32, 32>}, {transform_indices = @transform_4, window_bounds = array<i64: 32, 8>}]} {
    %c0_i32 = arith.constant 0 : i32
    %0 = arith.cmpi eq, %arg1, %c0_i32 : i32
    %1 = arith.extui %0 : i1 to i32
    %c0_i32_0 = arith.constant 0 : i32
    %2 = arith.cmpi ne, %1, %c0_i32_0 : i32
    scf.if %2 {
      %cst_17 = arith.constant 0.000000e+00 : f32
      %17 = vector.broadcast %cst_17 : f32 to vector<32x32xf32>
      %c0_18 = arith.constant 0 : index
      %c0_19 = arith.constant 0 : index
      %18 = vector.load %arg7[%c0_18, %c0_19] : memref<32x32xf32, #tpu.memory_space<vmem>>, vector<32x32xf32>
      tpu.vector_store %arg7[%c0_18, %c0_19], %17 {strides = array<i32>} : memref<32x32xf32, #tpu.memory_space<vmem>>, vector<32x32xf32>,
      %cst_20 = arith.constant 0.000000e+00 : f32
      %19 = vector.broadcast %cst_20 : f32 to vector<32x8xf32>
      %c0_21 = arith.constant 0 : index
      %c0_22 = arith.constant 0 : index
      %20 = vector.load %arg8[%c0_21, %c0_22] : memref<32x8xf32, #tpu.memory_space<vmem>>, vector<32x8xf32>
      tpu.vector_store %arg8[%c0_21, %c0_22], %19 {strides = array<i32>} : memref<32x8xf32, #tpu.memory_space<vmem>>, vector<32x8xf32>,
    } else {
    }
    %c0 = arith.constant 0 : index
    %c0_1 = arith.constant 0 : index
    %3 = vector.load %arg2[%c0, %c0_1] : memref<32x16xbf16, #tpu.memory_space<vmem>>, vector<32x16xbf16>
    %c0_2 = arith.constant 0 : index
    %c0_3 = arith.constant 0 : index
    %4 = vector.load %arg7[%c0_2, %c0_3] : memref<32x32xf32, #tpu.memory_space<vmem>>, vector<32x32xf32>
    %c0_4 = arith.constant 0 : index
    %c0_5 = arith.constant 0 : index
    %5 = vector.load %arg3[%c0_4, %c0_5] : memref<16x32xbf16, #tpu.memory_space<vmem>>, vector<16x32xbf16>
    %cst = arith.constant dense<0.000000e+00> : vector<32x32xf32>
    %6 = tpu.matmul %3, %5, %cst {dimension_numbers = #tpu.dot_dimension_numbers<[1], [0], [0], [1], [0, 0, 1, 1], [], []>} : vector<32x16xbf16>, vector<16x32xbf16>, vector<32x32xf32> -> vector<32x32xf32>
    %7 = arith.addf %4, %6 : vector<32x32xf32>
    %c0_6 = arith.constant 0 : index
    %c0_7 = arith.constant 0 : index
    %8 = vector.load %arg7[%c0_6, %c0_7] : memref<32x32xf32, #tpu.memory_space<vmem>>, vector<32x32xf32>
    tpu.vector_store %arg7[%c0_6, %c0_7], %7 {strides = array<i32>} : memref<32x32xf32, #tpu.memory_space<vmem>>, vector<32x32xf32>,
    %c0_8 = arith.constant 0 : index
    %c0_9 = arith.constant 0 : index
    %9 = vector.load %arg8[%c0_8, %c0_9] : memref<32x8xf32, #tpu.memory_space<vmem>>, vector<32x8xf32>
    %c0_10 = arith.constant 0 : index
    %c0_11 = arith.constant 0 : index
    %10 = vector.load %arg4[%c0_10, %c0_11] : memref<16x8xbf16, #tpu.memory_space<vmem>>, vector<16x8xbf16>
    %cst_12 = arith.constant dense<0.000000e+00> : vector<32x8xf32>
    %11 = tpu.matmul %3, %10, %cst_12 {dimension_numbers = #tpu.dot_dimension_numbers<[1], [0], [0], [1], [0, 0, 1, 1], [], []>} : vector<32x16xbf16>, vector<16x8xbf16>, vector<32x8xf32> -> vector<32x8xf32>
    %12 = arith.addf %9, %11 : vector<32x8xf32>
    %c0_13 = arith.constant 0 : index
    %c0_14 = arith.constant 0 : index
    %13 = vector.load %arg8[%c0_13, %c0_14] : memref<32x8xf32, #tpu.memory_space<vmem>>, vector<32x8xf32>
    tpu.vector_store %arg8[%c0_13, %c0_14], %12 {strides = array<i32>} : memref<32x8xf32, #tpu.memory_space<vmem>>, vector<32x8xf32>,
    %c0_i32_15 = arith.constant 0 : i32
    %14 = arith.cmpi eq, %arg1, %c0_i32_15 : i32
    %15 = arith.extui %14 : i1 to i32
    %c0_i32_16 = arith.constant 0 : i32
    %16 = arith.cmpi ne, %15, %c0_i32_16 : i32
    scf.if %16 {
      %c0_17 = arith.constant 0 : index
      %c0_18 = arith.constant 0 : index
      %17 = vector.load %arg7[%c0_17, %c0_18] : memref<32x32xf32, #tpu.memory_space<vmem>>, vector<32x32xf32>
      %18 = arith.truncf %17 : vector<32x32xf32> to vector<32x32xbf16>
      %c0_19 = arith.constant 0 : index
      %c0_20 = arith.constant 0 : index
      %19 = vector.load %arg5[%c0_19, %c0_20] : memref<32x32xbf16, #tpu.memory_space<vmem>>, vector<32x32xbf16>
      tpu.vector_store %arg5[%c0_19, %c0_20], %18 {strides = array<i32>} : memref<32x32xbf16, #tpu.memory_space<vmem>>, vector<32x32xbf16>,
      %c0_21 = arith.constant 0 : index
      %c0_22 = arith.constant 0 : index
      %20 = vector.load %arg8[%c0_21, %c0_22] : memref<32x8xf32, #tpu.memory_space<vmem>>, vector<32x8xf32>
      %c0_23 = arith.constant 0 : index
      %c0_24 = arith.constant 0 : index
      %21 = vector.load %arg6[%c0_23, %c0_24] : memref<32x8xf32, #tpu.memory_space<vmem>>, vector<32x8xf32>
      tpu.vector_store %arg6[%c0_23, %c0_24], %20 {strides = array<i32>} : memref<32x8xf32, #tpu.memory_space<vmem>>, vector<32x8xf32>,
    } else {
    }
    return
  }
  func.func @transform_0(%arg0: i32, %arg1: i32) -> (i32, i32) {
    %c0_i32 = arith.constant 0 : i32
    return %arg0, %arg1 : i32, i32
  }
  func.func @transform_1(%arg0: i32, %arg1: i32) -> (i32, i32) {
    %c0_i32 = arith.constant 0 : i32
    %c0_i32_0 = arith.constant 0 : i32
    return %arg1, %c0_i32 : i32, i32
  }
  func.func @transform_2(%arg0: i32, %arg1: i32) -> (i32, i32) {
    %c0_i32 = arith.constant 0 : i32
    %c0_i32_0 = arith.constant 0 : i32
    return %arg1, %c0_i32 : i32, i32
  }
  func.func @transform_3(%arg0: i32, %arg1: i32) -> (i32, i32) {
    %c0_i32 = arith.constant 0 : i32
    %c0_i32_0 = arith.constant 0 : i32
    return %arg0, %c0_i32 : i32, i32
  }
  func.func @transform_4(%arg0: i32, %arg1: i32) -> (i32, i32) {
    %c0_i32 = arith.constant 0 : i32
    %c0_i32_0 = arith.constant 0 : i32
    return %arg0, %c0_i32 : i32, i32
  }
}

</mosaic_0001>

<bundles_post_ra>
// kernel: tpu_custom_call.1
= control target key start
LH: loop header
LB: loop body
LE: loop exit
PB: predicated region body
PF: predicated region fallthrough
CT: control target
= control target key end

     0   :  { %vm58_vm0 = vcmask 130048   ;;  %vm22_vm1 = vcmask 261120   ;;  %v313_v4 = vmov 0.0   ;;  %s397_s0 = inlined_call_operand.vmem [shape: bf16[32,16], index: 0, kind: input, shape index: {}]   ;;  %s398_s1 = inlined_call_operand.vmem [shape: bf16[16,32], index: 1, kind: input, shape index: {}]   ;;  %s399_s2 = inlined_call_operand.vmem [shape: bf16[16,8], index: 2, kind: input, shape index: {}]   ;;  %s400_s3 = inlined_call_operand.hbm [shape: bf16[32,32], index: 3, kind: output, shape index: {0}]   ;;  %s401_s4 = inlined_call_operand.vmem [shape: f32[32,8], index: 4, kind: output, shape index: {1}]  }
   0x1   :  { %v287_v0 = vld [vmem:[%s398_s1] sm:$0xff]   ;;  %v290_v3 = vld [vmem:[%s397_s0 + $0x8] sm:$0xff]   ;;  %25 = vst.msk [vmem:[#allocation2 + $0x10] sm:$0xff] %vm22_vm1, %v313_v4  ;;  %23 = vst.msk [vmem:[#allocation2] sm:$0xff] %vm22_vm1, %v313_v4 }
   0x2   :  { %v288_v1 = vld [vmem:[%s399_s2] sm:$0xff]   ;;  %271 = vmatprep.subr.bf16.mxu0 %v287_v0  ;;  %24 = vst.msk [vmem:[#allocation2 + $0x8] sm:$0xff] %vm22_vm1, %v313_v4  ;;  %26 = vst.msk [vmem:[#allocation2 + $0x18] sm:$0xff] %vm22_vm1, %v313_v4 }
   0x3   :  { %v289_v2 = vld [vmem:[%s397_s0] sm:$0xff]   ;;  %277 = vmatprep.subr.bf16.mxu1 %v288_v1  ;;  %272 = vmatpush3.bf16.msra.mxu0 %v287_v0 }
   0x4   :  { %278 = vmatpush3.bf16.msra.mxu1 %v288_v1  ;;  %273 = vmatprep.mubr.msk.bf16.mxu0 %vm58_vm0, %v289_v2 }
   0x5   :  { %10 = vsyncpa [#allocation5], 0  ;;  %279 = vmatprep.mubr.msk.bf16.mxu1 %vm58_vm0, %v289_v2  ;;  %vm27_vm2 = vcmask 64512   ;;  %vm216_vm3 = vcmask 257024   ;;  %s314_s24 = smov [#allocation4]  }
   0x6   :  { %274 = vmatmul.mubr.msk.bf16.vlgmr.msra.gmra.mxu0 %vm58_vm0, %v290_v3  ;;  %30 = vst.msk [vmem:[#allocation3 + $0x10] sm:$0xff] %vm27_vm2, %v313_v4  ;;  %28 = vst.msk [vmem:[#allocation3] sm:$0xff] %vm27_vm2, %v313_v4  ;;  %s234_s25 = sshll.u32 %s314_s24, 4  ;;  %s235_s25 = int_to_ptr.vmem [resolvable:$true] %s234_s25 }
   0x7   :  { %280 = vmatmul.mubr.msk.bf16.vlgmr.msra.gmra.mxu1 %vm58_vm0, %v290_v3  ;;  %29 = vst.msk [vmem:[#allocation3 + $0x8] sm:$0xff] %vm27_vm2, %v313_v4  ;;  %31 = vst.msk [vmem:[#allocation3 + $0x18] sm:$0xff] %vm27_vm2, %v313_v4  ;;  %s291_s30 = scalar_lea.vmem %s235_s25, 256  ;;  %p296_p1 = scmp.lt.s32.totalorder %s235_s25, %s235_s25 }
   0x8   :  { %v38_v5 = vld [vmem:[#allocation2 + $0x10] sm:$0xff]  ;;  %v36_v8 = vld [vmem:[#allocation2] sm:$0xff]  ;;  %p292_p0 = scmp.ne.s32.totalorder %s235_s25, %s291_s30  ;;  %p297_p2 = scmp.lt.s32.totalorder %s291_s30, %s291_s30 }
   0x9   :  { %v39_v14 = vld [vmem:[#allocation2 + $0x18] sm:$0xff]  ;;  %v37_v20 = vld [vmem:[#allocation2 + $0x8] sm:$0xff] }
   0xa   :  { %p298_p3 = por %p297_p2, %p296_p1 }
   0xc   :  { %p299_p4 = pnand %p298_p3, %p292_p0 }
   0xd   :  { %v125_v6 = vld [vmem:[#allocation3 + $0x10] sm:$0xff]  ;;  %v123_v11 = vld [vmem:[#allocation3] sm:$0xff] }
   0xe   :  { %v126_v17 = vld [vmem:[#allocation3 + $0x18] sm:$0xff]  ;;  %v124_v23 = vld [vmem:[#allocation3 + $0x8] sm:$0xff] }
  0xc6   :  { %v275_v7 = vpop.f32.mrf.mxu0 }
  0xc7   :  { %v116_v9 = vadd.f32 %v275_v7, %v38_v5  ;;  %v281_v10 = vpop.f32.mrf.mxu1 }
  0xc8   :  { %v186_v12 = vadd.f32 %v281_v10, %v125_v6  ;;  %v99_v13 = vpop.f32.mrf.mxu0 }
  0xc9   :  { %121 = vst.msk [vmem:[#allocation2 + $0x10] sm:$0xff] %vm22_vm1, %v116_v9  ;;  %v114_v15 = vadd.f32 %v99_v13, %v36_v8  ;;  %v169_v16 = vpop.f32.mrf.mxu1 }
  0xca   :  { %191 = vst.msk [vmem:[#allocation3 + $0x10] sm:$0xff] %vm27_vm2, %v186_v12  ;;  %v184_v18 = vadd.f32 %v169_v16, %v123_v11  ;;  %v276_v19 = vpop.f32.mrf.mxu0 }
  0xcb   :  { %119 = vst.msk [vmem:[#allocation2] sm:$0xff] %vm22_vm1, %v114_v15  ;;  %v117_v21 = vadd.f32 %v276_v19, %v39_v14  ;;  %v282_v22 = vpop.f32.mrf.mxu1 }
  0xcc   :  { %189 = vst.msk [vmem:[#allocation3] sm:$0xff] %vm27_vm2, %v184_v18  ;;  %v187_v24 = vadd.f32 %v282_v22, %v126_v17  ;;  %v102_v25 = vpop.f32.mrf.mxu0 }
  0xcd   :  { %122 = vst.msk [vmem:[#allocation2 + $0x18] sm:$0xff] %vm22_vm1, %v117_v21  ;;  %v115_v26 = vadd.f32 %v102_v25, %v37_v20  ;;  %v172_v27 = vpop.f32.mrf.mxu1 }
  0xce   :  { %192 = vst.msk [vmem:[#allocation3 + $0x18] sm:$0xff] %vm27_vm2, %v187_v24  ;;  %v185_v28 = vadd.f32 %v172_v27, %v124_v23 }
  0xcf   :  { %120 = vst.msk [vmem:[#allocation2 + $0x8] sm:$0xff] %vm22_vm1, %v115_v26 }
  0xd0   :  { %190 = vst.msk [vmem:[#allocation3 + $0x8] sm:$0xff] %vm27_vm2, %v185_v28  ;;  %v198_v29 = vld [vmem:[#allocation2 + $0x10] sm:$0xff] }
  0xd1   :  { %v223_v30 = vld [vmem:[#allocation3 + $0x10] sm:$0xff]  ;;  %v263_v31 = vpack.c.bf16 %v198_v29, %v198_v29 }
  0xd2   :  { %227 = vst.msk [vmem:[%s401_s4 + $0x10] sm:$0xff] %vm27_vm2, %v223_v30  ;;  %v196_v32 = vld [vmem:[#allocation2] sm:$0xff] }
  0xd3   :  { %v221_v33 = vld [vmem:[#allocation3] sm:$0xff]  ;;  %v261_v34 = vpack.c.bf16 %v196_v32, %v196_v32  ;;  %219 = vst.msk [vmem:[#allocation4 + $0x8] sm:$0xf] %vm216_vm3, %v263_v31 }
  0xd4   :  { %225 = vst.msk [vmem:[%s401_s4] sm:$0xff] %vm27_vm2, %v221_v33  ;;  %v199_v35 = vld [vmem:[#allocation2 + $0x18] sm:$0xff] }
  0xd5   :  { %v224_v36 = vld [vmem:[#allocation3 + $0x18] sm:$0xff]  ;;  %v264_v37 = vpack.c.bf16 %v199_v35, %v199_v35  ;;  %217 = vst.msk [vmem:[#allocation4] sm:$0xf] %vm216_vm3, %v261_v34 }
  0xd6   :  { %228 = vst.msk [vmem:[%s401_s4 + $0x18] sm:$0xff] %vm27_vm2, %v224_v36  ;;  %v197_v38 = vld [vmem:[#allocation2 + $0x8] sm:$0xff] }
  0xd7   :  { %v222_v39 = vld [vmem:[#allocation3 + $0x8] sm:$0xff]  ;;  %v262_v40 = vpack.c.bf16 %v197_v38, %v197_v38  ;;  %220 = vst.msk [vmem:[#allocation4 + $0xc] sm:$0xf] %vm216_vm3, %v264_v37 }
  0xd8   :  { %226 = vst.msk [vmem:[%s401_s4 + $0x8] sm:$0xff] %vm27_vm2, %v222_v39 }
  0xd9   :  { %218 = vst.msk [vmem:[#allocation4 + $0x4] sm:$0xf] %vm216_vm3, %v262_v40 }
  0xda   :  { %302 = shalt.err (!%p299_p4)
}
  0xdb   :  { %s315_s5 = smov 64   ;;  %s316_s6 = smov 4  }
  0xdc   :  { %240 = dma.vmem_to_hbm [thread:$0]  %s235_s25, 256, %s400_s3, [#allocation5], %s315_s5, %s315_s5, %s316_s6  }
  0xdd   :  { %311 = dma.done.wait [#allocation5], 256  }
  0xde   :  { %312 = vsyncadd [#allocation5], 4294967040 }
  0xdf   :  { %248 = vsyncpa [#allocation5], 1 }

</bundles_post_ra>
